<compile_context>
chip_gen: v5e
topology: v5e:2x2
jax: 0.10.0
libtpu: 0.0.40
codegen_flags: <defaults>
</compile_context>

<pallas_src>
import jax
import jax.numpy as jnp
from jax.experimental import pallas as pl
from jax.experimental.pallas import tpu as pltpu

MIN_DEPTH_FACTOR = 0.8
MAX_DEPTH_FACTOR = 1.2
PROBE_LINEAR = 0
PROBE_CURVED = 1

# bf16 is exact for the 0/1 gather matrices and runs the MXU at full rate on
# v5e/v6e/v7x; the image is bf16-rounded once (<=0.4% rel err), which is fine
# for a data-augmentation op.  Pass jnp.float32 for bit-exact warping.
DEFAULT_COMPUTE_DTYPE = jnp.bfloat16


# ----------------------------- Pallas kernel --------------------------------
def _warp_mask_kernel(ry_ref, rxt_ref, mask_ref, img_ref, out_ref, x_scr):
    c, _, w = img_ref.shape
    ry = ry_ref[...]          # (h, h)   compute dtype (one-hot row gather)
    rxt = rxt_ref[...]        # (w, w)   compute dtype (transposed col gather)
    m = mask_ref[...]         # (h, w)   image dtype (f32 mask multiply)

    # Stage all channels side-by-side along the lane axis: (h, c*w).
    # Static, lane-tile-aligned slices (w is a multiple of 128) -> no repack.
    for ci in range(c):
        x_scr[:, ci * w:(ci + 1) * w] = img_ref[ci].astype(x_scr.dtype)

    # Row warp for all channels in ONE wide MXU matmul: (h,h) @ (h, c*w).
    tmp = jnp.dot(ry, x_scr[...], preferred_element_type=jnp.float32)

    # Column warp + fused beam-mask multiply, per channel (static loop, c small).
    for ci in range(c):
        t_c = tmp[:, ci * w:(ci + 1) * w].astype(rxt.dtype)
        warped = jnp.dot(t_c, rxt, preferred_element_type=jnp.float32)
        out_ref[ci] = (m * warped).astype(out_ref.dtype)


def _warp_and_mask(image, mask_hw, ry, rxt):
    """Single gridless invocation: all operands live once in VMEM, constants
    (Ry, Rx^T, mask) are loaded exactly once (no per-channel double-buffering)."""
    c, h, w = image.shape
    return pl.pallas_call(
        _warp_mask_kernel,
        out_shape=jax.ShapeDtypeStruct((c, h, w), image.dtype),
        scratch_shapes=[pltpu.VMEM((h, c * w), ry.dtype)],
    )(ry, rxt, mask_hw, image)


# ------------------------------- host glue -----------------------------------
def _gather_matrix(n, scale, t, dtype):
    """Row one-hot resampling matrix reproducing torchvision.affine (angle=0,
    shear=0, center=image center) + nearest / zeros padding along one axis:
    src = (i - c - t)/scale + c;  R[i, src(i)] = 1 when src is in-bounds."""
    i = jnp.arange(n, dtype=jnp.float32)
    c = (n - 1) / 2.0
    src = (i - c - t) / scale + c
    idx = jnp.round(src).astype(jnp.int32)          # round-half-to-even (nearbyint)
    valid = (idx >= 0) & (idx <= n - 1)
    onehot = jax.nn.one_hot(jnp.clip(idx, 0, n - 1), n, dtype=dtype)
    return onehot * valid[:, None].astype(dtype)


def _gather_matrix_t(n, scale, t, dtype):
    """Column resampling matrix built ALREADY TRANSPOSED (and validity-masked)
    so the kernel computes img @ Rx^T with no host-side transpose op:
    Rt[k, j] = 1 iff output column j samples in-bounds source column k."""
    j = jnp.arange(n, dtype=jnp.float32)
    c = (n - 1) / 2.0
    src = (j - c - t) / scale + c
    idx = jnp.round(src).astype(jnp.int32)
    valid = (idx >= 0) & (idx <= n - 1)
    onehot = jax.nn.one_hot(jnp.clip(idx, 0, n - 1), n, dtype=dtype, axis=0)
    return onehot * valid[None, :].astype(dtype)


def _resize_matrix_t(out_n, in_n):
    """Transposed bilinear resize weights (in_n, out_n), align_corners=False."""
    j = jnp.arange(out_n, dtype=jnp.float32)
    src = (j + 0.5) * (in_n / out_n) - 0.5
    lo = jnp.floor(src)
    frac = src - lo
    lo_i = jnp.clip(lo.astype(jnp.int32), 0, in_n - 1)
    hi_i = jnp.clip(lo.astype(jnp.int32) + 1, 0, in_n - 1)
    w_lo = jax.nn.one_hot(lo_i, in_n, dtype=jnp.float32, axis=0) * (1.0 - frac)[None, :]
    w_hi = jax.nn.one_hot(hi_i, in_n, dtype=jnp.float32, axis=0) * frac[None, :]
    return w_lo + w_hi


def _point_of_intersection(kp):
    # TODO(synk): original get_point_of_intersection not provided; assume the
    # virtual apex = intersection of the left beam edge (x1,y1)-(x3,y3) with
    # the right beam edge (x2,y2)-(x4,y4).
    x1, y1, x2, y2, x3, y3, x4, y4 = [kp[i] for i in range(8)]
    denom = (x1 - x3) * (y2 - y4) - (y1 - y3) * (x2 - x4)
    a = x1 * y3 - y1 * x3
    b = x2 * y4 - y2 * x4
    px = (a * (x2 - x4) - (x1 - x3) * b) / denom
    py = (a * (y2 - y4) - (y1 - y3) * b) / denom
    return px, py


def depth_change(image, label, keypoints, mask, probe, key,
                 min_depth_factor=MIN_DEPTH_FACTOR,
                 max_depth_factor=MAX_DEPTH_FACTOR,
                 compute_dtype=DEFAULT_COMPUTE_DTYPE):
    """JAX/Pallas equivalent of DepthChange.forward (eager; probe / scale<1
    branching is host-side Python, matching the PyTorch data-dependent ifs --
    the float(scale) branch forces a host sync and is eager-only by design)."""
    c, h, w = image.shape
    scale = min_depth_factor + jax.random.uniform(key, (), jnp.float32) * (
        max_depth_factor - min_depth_factor)

    if probe == PROBE_LINEAR:
        translate_x = jnp.float32(0.0)
        translate_y = (scale - 1.0) * h / 2.0
    else:
        x_itn, _y_itn = _point_of_intersection(keypoints)
        translate_x = (scale - 1.0) * (w / 2.0 - x_itn)
        translate_y = (scale - 1.0) * (h / 2.0 - keypoints[1])

    ry = _gather_matrix(h, scale, translate_y, compute_dtype)        # (h, h)

    if probe == PROBE_LINEAR and float(scale) < 1.0:
        # Zoom-out on a linear probe: horizontal crop + bilinear resize back to
        # (h, w), folded into the (already transposed) column resampling matrix;
        # no mask multiply on this path.
        # TODO(synk): tvf.resize_image interpolation assumed bilinear,
        # align_corners=False, antialias off.
        x_diff = int((1.0 - float(scale)) * w / 2.0)
        wc = w - 2 * x_diff
        rxt_f32 = _gather_matrix_t(w, scale, translate_x, jnp.float32)
        rxt = (rxt_f32[:, x_diff:w - x_diff] @ _resize_matrix_t(w, wc)
               ).astype(compute_dtype)                               # (w, w)
        kernel_mask = jnp.ones((h, w), dtype=image.dtype)
    else:
        rxt = _gather_matrix_t(w, scale, translate_x, compute_dtype)  # (w, w)
        kernel_mask = mask[0].astype(image.dtype)                     # (h, w)

    new_image = _warp_and_mask(image, kernel_mask, ry, rxt)
    return new_image, label, keypoints, mask, probe


# --------------------------------- demo --------------------------------------
if __name__ == "__main__":
    key = jax.random.PRNGKey(0)
    k_img, k_scale = jax.random.split(key)

    c, h, w = 3, 128, 128
    image = jax.random.normal(k_img, (c, h, w), dtype=jnp.float32)
    label = jnp.int32(1)
    # beam keypoints [x1,y1, x2,y2, x3,y3, x4,y4]:
    # top-left, top-right, bottom-left, bottom-right of a curvilinear fan
    keypoints = jnp.array([44.0, 8.0, 84.0, 8.0, 4.0, 120.0, 124.0, 120.0],
                          dtype=jnp.float32)
    # simple fan-shaped beam mask, shape (1, h, w)
    yy = jnp.arange(h, dtype=jnp.float32)[:, None]
    xx = jnp.arange(w, dtype=jnp.float32)[None, :]
    mask = (jnp.abs(xx - (w - 1) / 2.0) <= (0.45 * yy + 20.0)
            ).astype(jnp.float32)[None]
    probe = PROBE_CURVED

    out_img, out_label, out_kp, out_mask, out_probe = depth_change(
        image, label, keypoints, mask, probe, k_scale)
    jax.block_until_ready(out_img)

    assert out_img.shape == image.shape and out_img.dtype == image.dtype
    assert bool(jnp.all(jnp.isfinite(out_img)))

    # exercise the linear-probe zoom-out path as well (crop + resize, no mask)
    out2, *_ = depth_change(image, label, keypoints, mask, PROBE_LINEAR,
                            jax.random.PRNGKey(3))
    jax.block_until_ready(out2)
    assert out2.shape == image.shape and out2.dtype == image.dtype

    print("KERNEL_OK")
</pallas_src>

<mosaic_0001>
module attributes {stable_mosaic.version = 11 : i64} {
  func.func @_warp_mask_kernel(%arg0: memref<128x128xbf16, #tpu.memory_space<vmem>>, %arg1: memref<128x128xbf16, #tpu.memory_space<vmem>>, %arg2: memref<128x128xf32, #tpu.memory_space<vmem>>, %arg3: memref<3x128x128xf32, #tpu.memory_space<vmem>>, %arg4: memref<3x128x128xf32, #tpu.memory_space<vmem>>, %arg5: memref<128x384xbf16, #tpu.memory_space<vmem>>) attributes {dimension_semantics = [], scalar_prefetch = 0 : i64, scratch_operands = 1 : i64, tpu.core_type = #tpu.core_type<tc>} {
    %c0 = arith.constant 0 : index
    %c0_0 = arith.constant 0 : index
    %0 = vector.load %arg0[%c0, %c0_0] : memref<128x128xbf16, #tpu.memory_space<vmem>>, vector<128x128xbf16>
    %c0_1 = arith.constant 0 : index
    %c0_2 = arith.constant 0 : index
    %1 = vector.load %arg1[%c0_1, %c0_2] : memref<128x128xbf16, #tpu.memory_space<vmem>>, vector<128x128xbf16>
    %c0_3 = arith.constant 0 : index
    %c0_4 = arith.constant 0 : index
    %2 = vector.load %arg2[%c0_3, %c0_4] : memref<128x128xf32, #tpu.memory_space<vmem>>, vector<128x128xf32>
    %c0_5 = arith.constant 0 : index
    %c0_6 = arith.constant 0 : index
    %c0_7 = arith.constant 0 : index
    %3 = vector.load %arg3[%c0_5, %c0_6, %c0_7] : memref<3x128x128xf32, #tpu.memory_space<vmem>>, vector<1x128x128xf32>
    %4 = vector.shape_cast %3 : vector<1x128x128xf32> to vector<128x128xf32>
    %5 = arith.truncf %4 : vector<128x128xf32> to vector<128x128xbf16>
    %c0_8 = arith.constant 0 : index
    %c0_9 = arith.constant 0 : index
    %6 = vector.load %arg5[%c0_8, %c0_9] : memref<128x384xbf16, #tpu.memory_space<vmem>>, vector<128x128xbf16>
    tpu.vector_store %arg5[%c0_8, %c0_9], %5 {strides = array<i32>} : memref<128x384xbf16, #tpu.memory_space<vmem>>, vector<128x128xbf16>,
    %c1 = arith.constant 1 : index
    %c0_10 = arith.constant 0 : index
    %c0_11 = arith.constant 0 : index
    %7 = vector.load %arg3[%c1, %c0_10, %c0_11] : memref<3x128x128xf32, #tpu.memory_space<vmem>>, vector<1x128x128xf32>
    %8 = vector.shape_cast %7 : vector<1x128x128xf32> to vector<128x128xf32>
    %9 = arith.truncf %8 : vector<128x128xf32> to vector<128x128xbf16>
    %c0_12 = arith.constant 0 : index
    %c128 = arith.constant 128 : index
    %10 = vector.load %arg5[%c0_12, %c128] : memref<128x384xbf16, #tpu.memory_space<vmem>>, vector<128x128xbf16>
    tpu.vector_store %arg5[%c0_12, %c128], %9 {strides = array<i32>} : memref<128x384xbf16, #tpu.memory_space<vmem>>, vector<128x128xbf16>,
    %c2 = arith.constant 2 : index
    %c0_13 = arith.constant 0 : index
    %c0_14 = arith.constant 0 : index
    %11 = vector.load %arg3[%c2, %c0_13, %c0_14] : memref<3x128x128xf32, #tpu.memory_space<vmem>>, vector<1x128x128xf32>
    %12 = vector.shape_cast %11 : vector<1x128x128xf32> to vector<128x128xf32>
    %13 = arith.truncf %12 : vector<128x128xf32> to vector<128x128xbf16>
    %c0_15 = arith.constant 0 : index
    %c256 = arith.constant 256 : index
    %14 = vector.load %arg5[%c0_15, %c256] : memref<128x384xbf16, #tpu.memory_space<vmem>>, vector<128x128xbf16>
    tpu.vector_store %arg5[%c0_15, %c256], %13 {strides = array<i32>} : memref<128x384xbf16, #tpu.memory_space<vmem>>, vector<128x128xbf16>,
    %c0_16 = arith.constant 0 : index
    %c0_17 = arith.constant 0 : index
    %15 = vector.load %arg5[%c0_16, %c0_17] : memref<128x384xbf16, #tpu.memory_space<vmem>>, vector<128x384xbf16>
    %cst = arith.constant dense<0.000000e+00> : vector<128x384xf32>
    %16 = tpu.matmul %0, %15, %cst {dimension_numbers = #tpu.dot_dimension_numbers<[1], [0], [0], [1], [0, 0, 1, 1], [], []>} : vector<128x128xbf16>, vector<128x384xbf16>, vector<128x384xf32> -> vector<128x384xf32>
    %17 = vector.extract_strided_slice %16 {offsets = [0, 0], sizes = [128, 128], strides = [1, 1]} : vector<128x384xf32> to vector<128x128xf32>
    %18 = arith.truncf %17 : vector<128x128xf32> to vector<128x128xbf16>
    %cst_18 = arith.constant dense<0.000000e+00> : vector<128x128xf32>
    %19 = tpu.matmul %18, %1, %cst_18 {dimension_numbers = #tpu.dot_dimension_numbers<[1], [0], [0], [1], [0, 0, 1, 1], [], []>} : vector<128x128xbf16>, vector<128x128xbf16>, vector<128x128xf32> -> vector<128x128xf32>
    %20 = arith.mulf %2, %19 : vector<128x128xf32>
    %c0_19 = arith.constant 0 : index
    %c0_20 = arith.constant 0 : index
    %c0_21 = arith.constant 0 : index
    %21 = vector.load %arg4[%c0_19, %c0_20, %c0_21] : memref<3x128x128xf32, #tpu.memory_space<vmem>>, vector<1x128x128xf32>
    %22 = vector.shape_cast %21 : vector<1x128x128xf32> to vector<128x128xf32>
    %23 = vector.shape_cast %20 : vector<128x128xf32> to vector<1x128x128xf32>
    tpu.vector_store %arg4[%c0_19, %c0_20, %c0_21], %23 {strides = array<i32>} : memref<3x128x128xf32, #tpu.memory_space<vmem>>, vector<1x128x128xf32>,
    %24 = vector.extract_strided_slice %16 {offsets = [0, 128], sizes = [128, 128], strides = [1, 1]} : vector<128x384xf32> to vector<128x128xf32>
    %25 = arith.truncf %24 : vector<128x128xf32> to vector<128x128xbf16>
    %cst_22 = arith.constant dense<0.000000e+00> : vector<128x128xf32>
    %26 = tpu.matmul %25, %1, %cst_22 {dimension_numbers = #tpu.dot_dimension_numbers<[1], [0], [0], [1], [0, 0, 1, 1], [], []>} : vector<128x128xbf16>, vector<128x128xbf16>, vector<128x128xf32> -> vector<128x128xf32>
    %27 = arith.mulf %2, %26 : vector<128x128xf32>
    %c1_23 = arith.constant 1 : index
    %c0_24 = arith.constant 0 : index
    %c0_25 = arith.constant 0 : index
    %28 = vector.load %arg4[%c1_23, %c0_24, %c0_25] : memref<3x128x128xf32, #tpu.memory_space<vmem>>, vector<1x128x128xf32>
    %29 = vector.shape_cast %28 : vector<1x128x128xf32> to vector<128x128xf32>
    %30 = vector.shape_cast %27 : vector<128x128xf32> to vector<1x128x128xf32>
    tpu.vector_store %arg4[%c1_23, %c0_24, %c0_25], %30 {strides = array<i32>} : memref<3x128x128xf32, #tpu.memory_space<vmem>>, vector<1x128x128xf32>,
    %31 = vector.extract_strided_slice %16 {offsets = [0, 256], sizes = [128, 128], strides = [1, 1]} : vector<128x384xf32> to vector<128x128xf32>
    %32 = arith.truncf %31 : vector<128x128xf32> to vector<128x128xbf16>
    %cst_26 = arith.constant dense<0.000000e+00> : vector<128x128xf32>
    %33 = tpu.matmul %32, %1, %cst_26 {dimension_numbers = #tpu.dot_dimension_numbers<[1], [0], [0], [1], [0, 0, 1, 1], [], []>} : vector<128x128xbf16>, vector<128x128xbf16>, vector<128x128xf32> -> vector<128x128xf32>
    %34 = arith.mulf %2, %33 : vector<128x128xf32>
    %c2_27 = arith.constant 2 : index
    %c0_28 = arith.constant 0 : index
    %c0_29 = arith.constant 0 : index
    %35 = vector.load %arg4[%c2_27, %c0_28, %c0_29] : memref<3x128x128xf32, #tpu.memory_space<vmem>>, vector<1x128x128xf32>
    %36 = vector.shape_cast %35 : vector<1x128x128xf32> to vector<128x128xf32>
    %37 = vector.shape_cast %34 : vector<128x128xf32> to vector<1x128x128xf32>
    tpu.vector_store %arg4[%c2_27, %c0_28, %c0_29], %37 {strides = array<i32>} : memref<3x128x128xf32, #tpu.memory_space<vmem>>, vector<1x128x128xf32>,
    return
  }
}

</mosaic_0001>

<bundles_post_ra>
// kernel: tpu_custom_call.1
= control target key start
LH: loop header
LB: loop body
LE: loop exit
PB: predicated region body
PF: predicated region fallthrough
CT: control target
= control target key end

     0   :  { %9 = vsyncpa [#allocation4], 0  ;;  %s1469_s0 = inlined_call_operand.hbm [shape: bf16[128,128], index: 0, kind: input, shape index: {}]   ;;  %s1470_s1 = inlined_call_operand.hbm [shape: bf16[128,128], index: 1, kind: input, shape index: {}]   ;;  %s1471_s2 = inlined_call_operand.hbm [shape: f32[128,128], index: 2, kind: input, shape index: {}]   ;;  %s1472_s3 = inlined_call_operand.hbm [shape: f32[3,128,128], index: 3, kind: input, shape index: {}]   ;;  %s1473_s4 = inlined_call_operand.hbm [shape: f32[3,128,128], index: 4, kind: output, shape index: {}]  }
   0x1   :  { %10 = vsyncpa [#allocation7], 0 }
   0x2   :  { %11 = vsyncpa [#allocation10], 0 }
   0x3   :  { %12 = vsyncpa [#allocation5], 0  ;;  %s30_s17 = sshll.u32 %s1470_s1, 4  ;;  %s1321_s18 = smov [#allocation6]   ;;  %s31_s17 = int_to_ptr.hbm [resolvable:$true] %s30_s17 }
   0x4   :  { %s32_s19 = sshll.u32 %s1321_s18, 4  ;;  %s17_s22 = sshll.u32 %s1469_s0, 4  ;;  %s33_s19 = int_to_ptr.vmem [resolvable:$true] %s32_s19  ;;  %s18_s22 = int_to_ptr.hbm [resolvable:$true] %s17_s22 }
   0x5   :  { %s1322_s23 = smov 64   ;;  %s1323_s24 = smov 4  }
   0x6   :  { %38 = dma.hbm_to_vmem [thread:$0]  %s31_s17, 1024, %s33_s19, [#allocation7], %s1322_s23, %s1322_s23, %s1323_s24  }
   0x7   :  { %s1324_s25 = smov [#allocation3]   ;;  %s43_s29 = sshll.u32 %s1471_s2, 4  ;;  %s44_s29 = int_to_ptr.hbm [resolvable:$true] %s43_s29 }
   0x8   :  { %s19_s26 = sshll.u32 %s1324_s25, 4  ;;  %s1325_s1 = smov [#allocation8]   ;;  %s20_s26 = int_to_ptr.vmem [resolvable:$true] %s19_s26 }
   0x9   :  { %25 = dma.hbm_to_vmem [thread:$0]  %s18_s22, 1024, %s20_s26, [#allocation4], %s1322_s23, %s1322_s23, %s1323_s24  }
   0xa   :  { %s45_s30 = sshll.u32 %s1325_s1, 4  ;;  %s56_s0 = sshll.u32 %s1472_s3, 4  ;;  %s46_s30 = int_to_ptr.vmem [resolvable:$true] %s45_s30  ;;  %s57_s0 = int_to_ptr.hbm [resolvable:$true] %s56_s0 }
   0xb   :  { %s1326_s7 = smov 128   ;;  %s1327_s8 = smov 8  }
   0xc   :  { %51 = dma.hbm_to_vmem [thread:$0]  %s44_s29, 2048, %s46_s30, [#allocation7], %s1326_s7, %s1326_s7, %s1327_s8  }
   0xd   :  { %s1328_s9 = smov [#allocation9]  }
   0xe   :  { %s58_s10 = sshll.u32 %s1328_s9, 4  ;;  %s59_s10 = int_to_ptr.vmem [resolvable:$true] %s58_s10 }
   0xf   :  { %64 = dma.hbm_to_vmem [thread:$0]  %s57_s0, 6144, %s59_s10, [#allocation10], %s1326_s7, %s1326_s7, %s1327_s8  }
  0x10   :  { %1313 = dma.done.wait [#allocation4], 1024  }
  0x11   :  { %1314 = vsyncadd [#allocation4], 4294966272 }
  0x12   :  { %1315 = dma.done.wait [#allocation7], 3072  }
  0x13   :  { %1316 = vsyncadd [#allocation7], 4294964224 }
  0x14   :  { %1317 = dma.done.wait [#allocation10], 6144  }
  0x15   :  { %1318 = vsyncadd [#allocation10], 4294961152  ;;  %v143_v0 = vld [vmem:[#allocation9 + $0x70] sm:$0xff]  ;;  %v144_v1 = vld [vmem:[#allocation9 + $0x78] sm:$0xff]  ;;  %s1329_s2 = smov [#allocation11]   ;;  %s953_s13 = sshll.u32 %s1473_s4, 4  ;;  %s954_s13 = int_to_ptr.hbm [resolvable:$true] %s953_s13 }
  0x16   :  { %v141_v2 = vld [vmem:[#allocation9 + $0x60] sm:$0xff]  ;;  %v159_v3 = vpack.c.bf16 %v143_v0, %v143_v0  ;;  %v160_v4 = vpack.c.bf16 %v144_v1, %v144_v1  ;;  %v142_v5 = vld [vmem:[#allocation9 + $0x68] sm:$0xff]  ;;  %v139_v7 = vld [vmem:[#allocation9 + $0x50] sm:$0xff]  ;;  %s951_s3 = sshll.u32 %s1329_s2, 4  ;;  %s952_s3 = int_to_ptr.vmem [resolvable:$true] %s951_s3 }
  0x17   :  { %v157_v6 = vpack.c.bf16 %v141_v2, %v141_v2  ;;  %v140_v8 = vld [vmem:[#allocation9 + $0x58] sm:$0xff]  ;;  %v158_v9 = vpack.c.bf16 %v142_v5, %v142_v5  ;;  %v137_v10 = vld [vmem:[#allocation9 + $0x40] sm:$0xff]  ;;  %v155_v11 = vpack.c.bf16 %v139_v7, %v139_v7  ;;  %v138_v12 = vld [vmem:[#allocation9 + $0x48] sm:$0xff] }
  0x18   :  { %175 = vst [vmem:[#allocation2 + $0xa8] sm:$0xf] %v159_v3  ;;  %v156_v13 = vpack.c.bf16 %v140_v8, %v140_v8  ;;  %v135_v14 = vld [vmem:[#allocation9 + $0x30] sm:$0xff]  ;;  %v153_v15 = vpack.c.bf16 %v137_v10, %v137_v10  ;;  %v136_v16 = vld [vmem:[#allocation9 + $0x38] sm:$0xff]  ;;  %v154_v17 = vpack.c.bf16 %v138_v12, %v138_v12  ;;  %v133_v18 = vld [vmem:[#allocation9 + $0x20] sm:$0xff] }
  0x19   :  { %176 = vst [vmem:[#allocation2 + $0xb4] sm:$0xf] %v160_v4  ;;  %v151_v19 = vpack.c.bf16 %v135_v14, %v135_v14  ;;  %v134_v20 = vld [vmem:[#allocation9 + $0x28] sm:$0xff]  ;;  %v152_v21 = vpack.c.bf16 %v136_v16, %v136_v16  ;;  %v131_v22 = vld [vmem:[#allocation9 + $0x10] sm:$0xff]  ;;  %v149_v23 = vpack.c.bf16 %v133_v18, %v133_v18  ;;  %v132_v24 = vld [vmem:[#allocation9 + $0x18] sm:$0xff] }
  0x1a   :  { %173 = vst [vmem:[#allocation2 + $0x90] sm:$0xf] %v157_v6  ;;  %v150_v26 = vpack.c.bf16 %v134_v20, %v134_v20  ;;  %v129_v27 = vld [vmem:[#allocation9] sm:$0xff]  ;;  %v147_v29 = vpack.c.bf16 %v131_v22, %v131_v22  ;;  %v130_v30 = vld [vmem:[#allocation9 + $0x8] sm:$0xff]  ;;  %v148_v33 = vpack.c.bf16 %v132_v24, %v132_v24  ;;  %v241_v36 = vld [vmem:[#allocation9 + $0x170] sm:$0xff] }
  0x1b   :  { %174 = vst [vmem:[#allocation2 + $0x9c] sm:$0xf] %v158_v9  ;;  %v145_v35 = vpack.c.bf16 %v129_v27, %v129_v27  ;;  %v242_v37 = vld [vmem:[#allocation9 + $0x178] sm:$0xff]  ;;  %v146_v40 = vpack.c.bf16 %v130_v30, %v130_v30  ;;  %v239_v41 = vld [vmem:[#allocation9 + $0x160] sm:$0xff]  ;;  %v257_v43 = vpack.c.bf16 %v241_v36, %v241_v36  ;;  %v240_v44 = vld [vmem:[#allocation9 + $0x168] sm:$0xff] }
  0x1c   :  { %171 = vst [vmem:[#allocation2 + $0x78] sm:$0xf] %v155_v11  ;;  %v258_v45 = vpack.c.bf16 %v242_v37, %v242_v37  ;;  %v255_v46 = vpack.c.bf16 %v239_v41, %v239_v41  ;;  %v256_v48 = vpack.c.bf16 %v240_v44, %v240_v44  ;;  %v192_v54 = vld [vmem:[#allocation9 + $0xf0] sm:$0xff]  ;;  %v193_v55 = vld [vmem:[#allocation9 + $0xf8] sm:$0xff]  ;;  %v190_v61 = vld [vmem:[#allocation9 + $0xe0] sm:$0xff] }
  0x1d   :  { %172 = vst [vmem:[#allocation2 + $0x84] sm:$0xf] %v156_v13  ;;  %v208_v56 = vpack.c.bf16 %v192_v54, %v192_v54  ;;  %v209_v57 = vpack.c.bf16 %v193_v55, %v193_v55  ;;  %v191_v62 = vld [vmem:[#allocation9 + $0xe8] sm:$0xff]  ;;  %v206_v63 = vpack.c.bf16 %v190_v61, %v190_v61  ;;  %v237_v1 = vld [vmem:[#allocation9 + $0x150] sm:$0xff]  ;;  %v238_v2 = vld [vmem:[#allocation9 + $0x158] sm:$0xff] }
  0x1e   :  { %169 = vst [vmem:[#allocation2 + $0x60] sm:$0xf] %v153_v15  ;;  %v207_v3 = vpack.c.bf16 %v191_v62, %v191_v62  ;;  %v253_v5 = vpack.c.bf16 %v237_v1, %v237_v1  ;;  %v254_v6 = vpack.c.bf16 %v238_v2, %v238_v2  ;;  %v235_v7 = vld [vmem:[#allocation9 + $0x140] sm:$0xff]  ;;  %v236_v8 = vld [vmem:[#allocation9 + $0x148] sm:$0xff]  ;;  %v188_v9 = vld [vmem:[#allocation9 + $0xd0] sm:$0xff] }
  0x1f   :  { %v1086_v25 = vld [vmem:[#allocation2 + $0xa8] sm:$0xf]  ;;  %170 = vst [vmem:[#allocation2 + $0x6c] sm:$0xf] %v154_v17  ;;  %v251_v11 = vpack.c.bf16 %v235_v7, %v235_v7  ;;  %v252_v12 = vpack.c.bf16 %v236_v8, %v236_v8  ;;  %v189_v13 = vld [vmem:[#allocation9 + $0xd8] sm:$0xff]  ;;  %v204_v14 = vpack.c.bf16 %v188_v9, %v188_v9  ;;  %v186_v22 = vld [vmem:[#allocation9 + $0xc0] sm:$0xff] }
  0x20   :  { %v1166_v28 = vld [vmem:[#allocation2 + $0xb0] sm:$0xf0]  ;;  %167 = vst [vmem:[#allocation2 + $0x48] sm:$0xf] %v151_v19  ;;  %v205_v16 = vpack.c.bf16 %v189_v13, %v189_v13  ;;  %v178_v9 = vld [vmem:[#allocation9 + $0x80] sm:$0xff] }
  0x21   :  { %v1087_v31 = vor.u32 %v1166_v28, %v1086_v25  ;;  %v1074_v32 = vld [vmem:[#allocation2 + $0x90] sm:$0xf]  ;;  %168 = vst [vmem:[#allocation2 + $0x54] sm:$0xf] %v152_v21 }
  0x22   :  { %v1163_v34 = vld [vmem:[#allocation2 + $0x98] sm:$0xf0]  ;;  %165 = vst [vmem:[#allocation2 + $0x30] sm:$0xf] %v149_v23  ;;  %v187_v23 = vld [vmem:[#allocation9 + $0xc8] sm:$0xff] }
  0x23   :  { %483 = vmatpush.bf16.msra.mxu0 %v1087_v31  ;;  %1168 = vmatpush.bf16.msra.mxu2 %v1087_v31  ;;  %v1075_v38 = vor.u32 %v1163_v34, %v1074_v32  ;;  %v1062_v39 = vld [vmem:[#allocation2 + $0x78] sm:$0xf]  ;;  %166 = vst [vmem:[#allocation2 + $0x3c] sm:$0xf] %v150_v26  ;;  %v202_v26 = vpack.c.bf16 %v186_v22, %v186_v22  ;;  %v229_v22 = vld [vmem:[#allocation9 + $0x110] sm:$0xff] }
  0x24   :  { %v1160_v42 = vld [vmem:[#allocation2 + $0x80] sm:$0xf0]  ;;  %163 = vst [vmem:[#allocation2 + $0x18] sm:$0xf] %v147_v29  ;;  %v203_v27 = vpack.c.bf16 %v187_v23, %v187_v23  ;;  %v185_v34 = vld [vmem:[#allocation9 + $0xb8] sm:$0xff] }
  0x25   :  { %164 = vst [vmem:[#allocation2 + $0x24] sm:$0xf] %v148_v33  ;;  %v1063_v47 = vor.u32 %v1160_v42, %v1062_v39  ;;  %v1050_v49 = vld [vmem:[#allocation2 + $0x60] sm:$0xf]  ;;  %v184_v33 = vld [vmem:[#allocation9 + $0xb0] sm:$0xff]  ;;  %v230_v23 = vld [vmem:[#allocation9 + $0x118] sm:$0xff] }
  0x26   :  { %161 = vst [vmem:[#allocation2] sm:$0xf] %v145_v35  ;;  %v1157_v50 = vld [vmem:[#allocation2 + $0x68] sm:$0xf0]  ;;  %v200_v37 = vpack.c.bf16 %v184_v33, %v184_v33  ;;  %v1373_v39 = vld [vmem:[#allocation3] sm:$0xff] }
  0x27   :  { %484 = vmatpush.bf16.msra.mxu0 %v1075_v38  ;;  %1169 = vmatpush.bf16.msra.mxu2 %v1075_v38  ;;  %162 = vst [vmem:[#allocation2 + $0xc] sm:$0xf] %v146_v40  ;;  %v1051_v51 = vor.u32 %v1157_v50, %v1050_v49  ;;  %v1038_v52 = vld [vmem:[#allocation2 + $0x48] sm:$0xf]  ;;  %v201_v38 = vpack.c.bf16 %v185_v34, %v185_v34  ;;  %v1375_v40 = vld [vmem:[#allocation3 + $0x20] sm:$0xff]  ;;  %v233_v50 = vld [vmem:[#allocation9 + $0x130] sm:$0xff] }
  0x28   :  { %273 = vst [vmem:[#allocation2 + $0xb0] sm:$0xf] %v257_v43  ;;  %v1154_v53 = vld [vmem:[#allocation2 + $0x50] sm:$0xf0]  ;;  %v249_v55 = vpack.c.bf16 %v233_v50, %v233_v50  ;;  %v228_v33 = vld [vmem:[#allocation9 + $0x108] sm:$0xff]  ;;  %v1143_v50 = vld [vmem:[#allocation6 + $0x38] sm:$0xff] }
  0x29   :  { %274 = vst [vmem:[#allocation2 + $0xbc] sm:$0xf] %v258_v45  ;;  %v1039_v58 = vor.u32 %v1154_v53, %v1038_v52  ;;  %v1026_v59 = vld [vmem:[#allocation2 + $0x30] sm:$0xf]  ;;  %v182_v45 = vld [vmem:[#allocation9 + $0xa0] sm:$0xff] }
  0x2a   :  { %271 = vst [vmem:[#allocation2 + $0x98] sm:$0xf] %v255_v46  ;;  %v1151_v60 = vld [vmem:[#allocation2 + $0x38] sm:$0xf0] }
  0x2b   :  { %485 = vmatpush.bf16.msra.mxu0 %v1063_v47  ;;  %1170 = vmatpush.bf16.msra.mxu2 %v1063_v47  ;;  %272 = vst [vmem:[#allocation2 + $0xa4] sm:$0xf] %v256_v48  ;;  %v1014_v0 = vld [vmem:[#allocation2 + $0x18] sm:$0xf]  ;;  %v1027_v4 = vor.u32 %v1151_v60, %v1026_v59  ;;  %v183_v47 = vld [vmem:[#allocation9 + $0xa8] sm:$0xff]  ;;  %v198_v48 = vpack.c.bf16 %v182_v45, %v182_v45  ;;  %v1130_v45 = vld [vmem:[#allocation3 + $0x10] sm:$0xff] }
  0x2c   :  { %224 = vst [vmem:[#allocation2 + $0xac] sm:$0xf] %v208_v56  ;;  %v1148_v10 = vld [vmem:[#allocation2 + $0x20] sm:$0xf0]  ;;  %v199_v53 = vpack.c.bf16 %v183_v47, %v183_v47  ;;  %v232_v59 = vld [vmem:[#allocation9 + $0x128] sm:$0xff] }
  0x2d   :  { %225 = vst [vmem:[#allocation2 + $0xb8] sm:$0xf] %v209_v57  ;;  %v1015_v17 = vor.u32 %v1148_v10, %v1014_v0  ;;  %v1002_v18 = vld [vmem:[#allocation2] sm:$0xf]  ;;  %v248_v62 = vpack.c.bf16 %v232_v59, %v232_v59  ;;  %v181_v0 = vld [vmem:[#allocation9 + $0x98] sm:$0xff]  ;;  %v179_v10 = vld [vmem:[#allocation9 + $0x88] sm:$0xff] }
  0x2e   :  { %222 = vst [vmem:[#allocation2 + $0x94] sm:$0xf] %v206_v63  ;;  %v1145_v20 = vld [vmem:[#allocation2 + $0x8] sm:$0xf0]  ;;  %v180_v63 = vld [vmem:[#allocation9 + $0x90] sm:$0xff] }
  0x2f   :  { %486 = vmatpush.bf16.msra.mxu0 %v1051_v51  ;;  %1171 = vmatpush.bf16.msra.mxu2 %v1051_v51  ;;  %223 = vst [vmem:[#allocation2 + $0xa0] sm:$0xf] %v207_v3  ;;  %v1094_v24 = vld [vmem:[#allocation2 + $0xb0] sm:$0xf]  ;;  %v1003_v29 = vor.u32 %v1145_v20, %v1002_v18  ;;  %v234_v51 = vld [vmem:[#allocation9 + $0x138] sm:$0xff]  ;;  %v196_v3 = vpack.c.bf16 %v180_v63, %v180_v63  ;;  %v1381_v18 = vld [vmem:[#allocation3 + $0x28] sm:$0xff] }
  0x30   :  { %269 = vst [vmem:[#allocation2 + $0x80] sm:$0xf] %v253_v5  ;;  %v1167_v25 = vld [vmem:[#allocation2 + $0xb8] sm:$0xf0]  ;;  %v250_v56 = vpack.c.bf16 %v234_v51, %v234_v51  ;;  %v197_v5 = vpack.c.bf16 %v181_v0, %v181_v0  ;;  %v1142_v51 = vld [vmem:[#allocation6 + $0x30] sm:$0xff] }
  0x31   :  { %270 = vst [vmem:[#allocation2 + $0x8c] sm:$0xf] %v254_v6  ;;  %v1095_v31 = vor.u32 %v1167_v25, %v1094_v24  ;;  %v1082_v35 = vld [vmem:[#allocation2 + $0x98] sm:$0xf]  ;;  %v245_v25 = vpack.c.bf16 %v229_v22, %v229_v22 }
  0x32   :  { %267 = vst [vmem:[#allocation2 + $0x68] sm:$0xf] %v251_v11  ;;  %v1164_v36 = vld [vmem:[#allocation2 + $0xa0] sm:$0xf0]  ;;  %v194_v11 = vpack.c.bf16 %v178_v9, %v178_v9 }
  0x33   :  { %487 = vmatpush.bf16.msra.mxu0 %v1039_v58  ;;  %1172 = vmatpush.bf16.msra.mxu2 %v1039_v58  ;;  %v1165_v15 = vld [vmem:[#allocation2 + $0xac] sm:$0xf]  ;;  %268 = vst [vmem:[#allocation2 + $0x74] sm:$0xf] %v252_v12  ;;  %v1083_v43 = vor.u32 %v1164_v36, %v1082_v35  ;;  %v231_v58 = vld [vmem:[#allocation9 + $0x120] sm:$0xff]  ;;  %v195_v12 = vpack.c.bf16 %v179_v10, %v179_v10 }
  0x34   :  { %v1088_v19 = vld [vmem:[#allocation2 + $0xb4] sm:$0xf0]  ;;  %220 = vst [vmem:[#allocation2 + $0x7c] sm:$0xf] %v204_v14  ;;  %v247_v61 = vpack.c.bf16 %v231_v58, %v231_v58  ;;  %v244_v36 = vpack.c.bf16 %v228_v33, %v228_v33 }
  0x35   :  { %v1091_v21 = vor.u32 %v1165_v15, %v1088_v19  ;;  %v1162_v28 = vld [vmem:[#allocation2 + $0x94] sm:$0xf]  ;;  %221 = vst [vmem:[#allocation2 + $0x88] sm:$0xf] %v205_v16 }
  0x36   :  { %v1076_v30 = vld [vmem:[#allocation2 + $0x9c] sm:$0xf0]  ;;  %218 = vst [vmem:[#allocation2 + $0x64] sm:$0xf] %v202_v26  ;;  %v246_v26 = vpack.c.bf16 %v230_v23, %v230_v23 }
  0x37   :  { %488 = vmatpush.bf16.msra.mxu0 %v1027_v4  ;;  %1173 = vmatpush.bf16.msra.mxu2 %v1027_v4  ;;  %v1079_v32 = vor.u32 %v1162_v28, %v1076_v30  ;;  %219 = vst [vmem:[#allocation2 + $0x70] sm:$0xf] %v203_v27  ;;  %v1070_v41 = vld [vmem:[#allocation2 + $0x80] sm:$0xf] }
  0x38   :  { %532 = vmatpush.bf16.msra.mxu1 %v1091_v21  ;;  %1176 = vmatpush.bf16.msra.mxu3 %v1091_v21  ;;  %v1161_v42 = vld [vmem:[#allocation2 + $0x88] sm:$0xf0]  ;;  %216 = vst [vmem:[#allocation2 + $0x4c] sm:$0xf] %v200_v37 }
  0x39   :  { %217 = vst [vmem:[#allocation2 + $0x58] sm:$0xf] %v201_v38  ;;  %v1071_v54 = vor.u32 %v1161_v42, %v1070_v41  ;;  %v1058_v1 = vld [vmem:[#allocation2 + $0x68] sm:$0xf] }
  0x3a   :  { %214 = vst [vmem:[#allocation2 + $0x34] sm:$0xf] %v198_v48  ;;  %v1158_v2 = vld [vmem:[#allocation2 + $0x70] sm:$0xf0]  ;;  %v1131_v48 = vld [vmem:[#allocation3 + $0x18] sm:$0xff] }
  0x3b   :  { %489 = vmatpush.bf16.msra.mxu0 %v1015_v17  ;;  %1174 = vmatpush.bf16.msra.mxu2 %v1015_v17  ;;  %v1159_v44 = vld [vmem:[#allocation2 + $0x7c] sm:$0xf]  ;;  %215 = vst [vmem:[#allocation2 + $0x40] sm:$0xf] %v199_v53  ;;  %v1059_v7 = vor.u32 %v1158_v2, %v1058_v1  ;;  %v1379_v17 = vld [vmem:[#allocation3 + $0x8] sm:$0xff]  ;;  %v1140_v53 = vld [vmem:[#allocation6 + $0x20] sm:$0xff] }
  0x3c   :  { %533 = vmatpush.bf16.msra.mxu1 %v1079_v32  ;;  %1177 = vmatpush.bf16.msra.mxu3 %v1079_v32  ;;  %v1064_v46 = vld [vmem:[#allocation2 + $0x84] sm:$0xf0]  ;;  %265 = vst [vmem:[#allocation2 + $0x50] sm:$0xf] %v249_v55  ;;  %v227_v32 = vld [vmem:[#allocation9 + $0x100] sm:$0xff] }
  0x3d   :  { %v1067_v49 = vor.u32 %v1159_v44, %v1064_v46  ;;  %v1156_v52 = vld [vmem:[#allocation2 + $0x64] sm:$0xf]  ;;  %266 = vst [vmem:[#allocation2 + $0x5c] sm:$0xf] %v250_v56  ;;  %v243_v35 = vpack.c.bf16 %v227_v32, %v227_v32  ;;  %v1387_v46 = vld [vmem:[#allocation3 + $0x30] sm:$0xff]  ;;  %v1137_v55 = vld [vmem:[#allocation6 + $0x8] sm:$0xff] }
  0x3e   :  { %v1052_v57 = vld [vmem:[#allocation2 + $0x6c] sm:$0xf0]  ;;  %263 = vst [vmem:[#allocation2 + $0x38] sm:$0xf] %v247_v61  ;;  %v1136_v56 = vld [vmem:[#allocation6] sm:$0xff] }
  0x3f   :  { %490 = vmatpush.bf16.msra.mxu0 %v1003_v29  ;;  %1175 = vmatpush.bf16.msra.mxu2 %v1003_v29  ;;  %v1055_v60 = vor.u32 %v1156_v52, %v1052_v57  ;;  %v1153_v4 = vld [vmem:[#allocation2 + $0x4c] sm:$0xf]  ;;  %264 = vst [vmem:[#allocation2 + $0x44] sm:$0xf] %v248_v62 }
  0x40   :  { %534 = vmatpush.bf16.msra.mxu1 %v1067_v49  ;;  %1178 = vmatpush.bf16.msra.mxu3 %v1067_v49  ;;  %v1040_v6 = vld [vmem:[#allocation2 + $0x54] sm:$0xf0]  ;;  %212 = vst [vmem:[#allocation2 + $0x1c] sm:$0xf] %v196_v3  ;;  %v1141_v52 = vld [vmem:[#allocation6 + $0x28] sm:$0xff] }
  0x41   :  { %v1043_v8 = vor.u32 %v1153_v4, %v1040_v6  ;;  %v1150_v13 = vld [vmem:[#allocation2 + $0x34] sm:$0xf]  ;;  %213 = vst [vmem:[#allocation2 + $0x28] sm:$0xf] %v197_v5  ;;  %v1392_v49 = vld [vmem:[#allocation3 + $0x38] sm:$0xff] }
  0x42   :  { %491 = vmatmul.bf16.vlgmr.msra.gmra.mxu0 %v1373_v39  ;;  %511 = vmatmul.bf16.vlgmr.msra.gmra.mxu2 %v1375_v40  ;;  %v1028_v14 = vld [vmem:[#allocation2 + $0x3c] sm:$0xf0]  ;;  %210 = vst [vmem:[#allocation2 + $0x4] sm:$0xf] %v194_v11 }
  0x43   :  { %581 = vmatpush.bf16.msrb.mxu2 %v1095_v31  ;;  %v1046_v15 = vld [vmem:[#allocation2 + $0x50] sm:$0xf]  ;;  %v1031_v16 = vor.u32 %v1150_v13, %v1028_v14  ;;  %211 = vst [vmem:[#allocation2 + $0x10] sm:$0xf] %v195_v12  ;;  %775 = vmatpush.bf16.msrb.mxu0 %v1143_v50 }
  0x44   :  { %535 = vmatpush.bf16.msra.mxu1 %v1055_v60  ;;  %1179 = vmatpush.bf16.msra.mxu3 %v1055_v60  ;;  %v1155_v19 = vld [vmem:[#allocation2 + $0x58] sm:$0xf0]  ;;  %261 = vst [vmem:[#allocation2 + $0x20] sm:$0xf] %v245_v25 }
  0x45   :  { %v1047_v20 = vor.u32 %v1155_v19, %v1046_v15  ;;  %v1034_v21 = vld [vmem:[#allocation2 + $0x38] sm:$0xf]  ;;  %262 = vst [vmem:[#allocation2 + $0x2c] sm:$0xf] %v246_v26 }
  0x46   :  { %v1152_v24 = vld [vmem:[#allocation2 + $0x40] sm:$0xf0]  ;;  %259 = vst [vmem:[#allocation2 + $0x8] sm:$0xf] %v243_v35 }
  0x47   :  { %582 = vmatpush.bf16.msrb.mxu2 %v1083_v43  ;;  %v1035_v27 = vor.u32 %v1152_v24, %v1034_v21  ;;  %v1147_v28 = vld [vmem:[#allocation2 + $0x1c] sm:$0xf]  ;;  %260 = vst [vmem:[#allocation2 + $0x14] sm:$0xf] %v244_v36  ;;  %776 = vmatpush.bf16.msrb.mxu0 %v1142_v51 }
  0x48   :  { %536 = vmatpush.bf16.msra.mxu1 %v1043_v8  ;;  %1180 = vmatpush.bf16.msra.mxu3 %v1043_v8  ;;  %v1016_v29 = vld [vmem:[#allocation2 + $0x24] sm:$0xf0] }
  0x49   :  { %v1019_v30 = vor.u32 %v1147_v28, %v1016_v29  ;;  %v1144_v31 = vld [vmem:[#allocation2 + $0x4] sm:$0xf] }
  0x4a   :  { %v1004_v34 = vld [vmem:[#allocation2 + $0xc] sm:$0xf0] }
  0x4b   :  { %583 = vmatpush.bf16.msrb.mxu2 %v1071_v54  ;;  %v1007_v37 = vor.u32 %v1144_v31, %v1004_v34  ;;  %v1022_v38 = vld [vmem:[#allocation2 + $0x20] sm:$0xf]  ;;  %777 = vmatpush.bf16.msrb.mxu0 %v1141_v52  ;;  %v1138_v54 = vld [vmem:[#allocation6 + $0x10] sm:$0xff] }
  0x4c   :  { %537 = vmatpush.bf16.msra.mxu1 %v1031_v16  ;;  %1181 = vmatpush.bf16.msra.mxu3 %v1031_v16  ;;  %v1149_v41 = vld [vmem:[#allocation2 + $0x28] sm:$0xf0] }
  0x4d   :  { %v1023_v42 = vor.u32 %v1149_v41, %v1022_v38  ;;  %v1010_v43 = vld [vmem:[#allocation2 + $0x8] sm:$0xf] }
  0x4e   :  { %v1146_v44 = vld [vmem:[#allocation2 + $0x10] sm:$0xf0] }
  0x4f   :  { %584 = vmatpush.bf16.msrb.mxu2 %v1059_v7  ;;  %v1011_v47 = vor.u32 %v1146_v44, %v1010_v43  ;;  %778 = vmatpush.bf16.msrb.mxu0 %v1140_v53 }
  0x50   :  { %538 = vmatpush.bf16.msra.mxu1 %v1019_v30  ;;  %1182 = vmatpush.bf16.msra.mxu3 %v1019_v30 }
  0x52   :  { %496 = vmatmul.bf16.gmra.mxu0 %v1379_v17  ;;  %516 = vmatmul.bf16.gmra.mxu2 %v1381_v18 }
  0x53   :  { %585 = vmatpush.bf16.msrb.mxu2 %v1047_v20 }
  0x54   :  { %539 = vmatpush.bf16.msra.mxu1 %v1007_v37  ;;  %1183 = vmatpush.bf16.msra.mxu3 %v1007_v37 }
  0x57   :  { %586 = vmatpush.bf16.msrb.mxu2 %v1035_v27  ;;  %540 = vmatmul.bf16.vlgmr.msra.gmra.mxu1 %v1373_v39 }
  0x58   :  { %560 = vmatmul.bf16.vlgmr.msra.gmra.mxu3 %v1375_v40  ;;  %865 = vmatpush.bf16.msrb.mxu1 %v1143_v50 }
  0x59   :  { %686 = vmatpush.bf16.msrb.mxu3 %v1143_v50 }
  0x5b   :  { %587 = vmatpush.bf16.msrb.mxu2 %v1023_v42 }
  0x5c   :  { %866 = vmatpush.bf16.msrb.mxu1 %v1142_v51 }
  0x5d   :  { %687 = vmatpush.bf16.msrb.mxu3 %v1142_v51 }
  0x5f   :  { %588 = vmatpush.bf16.msrb.mxu2 %v1011_v47 }
  0x60   :  { %867 = vmatpush.bf16.msrb.mxu1 %v1141_v52 }
  0x61   :  { %688 = vmatpush.bf16.msrb.mxu3 %v1141_v52 }
  0x62   :  { %501 = vmatmul.bf16.gmra.mxu0 %v1130_v45  ;;  %521 = vmatmul.bf16.gmra.mxu2 %v1387_v46 }
  0x64   :  { %868 = vmatpush.bf16.msrb.mxu1 %v1140_v53 }
  0x65   :  { %689 = vmatpush.bf16.msrb.mxu3 %v1140_v53 }
  0x67   :  { %545 = vmatmul.bf16.gmra.mxu1 %v1379_v17 }
  0x68   :  { %565 = vmatmul.bf16.gmra.mxu3 %v1381_v18 }
  0x72   :  { %506 = vmatmul.bf16.gmra.mxu0 %v1131_v48  ;;  %526 = vmatmul.bf16.gmra.mxu2 %v1392_v49 }
  0x77   :  { %550 = vmatmul.bf16.gmra.mxu1 %v1130_v45 }
  0x78   :  { %570 = vmatmul.bf16.gmra.mxu3 %v1387_v46 }
  0x82   :  { %589 = vmatmul.bf16.vlgmr.msrb.gmra.mxu2 %v1373_v39  ;;  %v1139_v39 = vld [vmem:[#allocation6 + $0x18] sm:$0xff] }
  0x83   :  { %690 = vmatpush.bf16.msrb.mxu3 %v1139_v39  ;;  %779 = vmatpush.bf16.msrb.mxu0 %v1139_v39 }
  0x84   :  { %869 = vmatpush.bf16.msrb.mxu1 %v1139_v39  ;;  %v1403_v39 = vld [vmem:[#allocation8] sm:$0xff] }
  0x87   :  { %555 = vmatmul.bf16.gmra.mxu1 %v1131_v48  ;;  %691 = vmatpush.bf16.msrb.mxu3 %v1138_v54 }
  0x88   :  { %575 = vmatmul.bf16.gmra.mxu3 %v1392_v49  ;;  %780 = vmatpush.bf16.msrb.mxu0 %v1138_v54 }
  0x89   :  { %870 = vmatpush.bf16.msrb.mxu1 %v1138_v54 }
  0x8b   :  { %692 = vmatpush.bf16.msrb.mxu3 %v1137_v55 }
  0x8c   :  { %781 = vmatpush.bf16.msrb.mxu0 %v1137_v55 }
  0x8d   :  { %871 = vmatpush.bf16.msrb.mxu1 %v1137_v55 }
  0x8f   :  { %693 = vmatpush.bf16.msrb.mxu3 %v1136_v56 }
  0x90   :  { %782 = vmatpush.bf16.msrb.mxu0 %v1136_v56 }
  0x91   :  { %872 = vmatpush.bf16.msrb.mxu1 %v1136_v56 }
  0x92   :  { %594 = vmatmul.bf16.gmra.mxu2 %v1379_v17 }
  0xa2   :  { %599 = vmatmul.bf16.gmra.mxu2 %v1130_v45 }
  0xb2   :  { %604 = vmatmul.bf16.gmra.mxu2 %v1131_v48 }
  0xbf   :  { %v492_v57 = vpop.f32.mrf.mxu0 }
  0xc2   :  { %609 = vmatmul.bf16.gmra.mxu2 %v1375_v40 }
  0xc5   :  { %v512_v58 = vpop.f32.mrf.mxu2 }
  0xc7   :  { %v494_v59 = vpop.f32.mrf.mxu0 }
  0xc8   :  { %v630_v60 = vpack.c.bf16 %v494_v59, %v492_v57  ;;  %v1406_v59 = vld [vmem:[#allocation8 + $0x8] sm:$0xff] }
  0xca   :  { %694 = vmatmul.bf16.vlgmr.msrb.gmra.mxu3 %v630_v60 }
  0xcd   :  { %v514_v61 = vpop.f32.mrf.mxu2 }
  0xce   :  { %v634_v24 = vpack.c.bf16 %v514_v61, %v512_v58 }
  0xcf   :  { %v497_v62 = vpop.f32.mrf.mxu0 }
  0xd2   :  { %614 = vmatmul.bf16.gmra.mxu2 %v1381_v18 }
  0xd4   :  { %v541_v2 = vpop.f32.mrf.mxu1 }
  0xd5   :  { %v517_v63 = vpop.f32.mrf.mxu2 }
  0xd7   :  { %v499_v0 = vpop.f32.mrf.mxu0 }
  0xd8   :  { %v631_v1 = vpack.c.bf16 %v499_v0, %v497_v62 }
  0xda   :  { %699 = vmatmul.bf16.gmra.mxu3 %v631_v1 }
  0xdb   :  { %v561_v19 = vpop.f32.mrf.mxu3 }
  0xdc   :  { %v543_v5 = vpop.f32.mrf.mxu1 }
  0xdd   :  { %v519_v3 = vpop.f32.mrf.mxu2  ;;  %v767_v6 = vpack.c.bf16 %v543_v5, %v541_v2 }
  0xde   :  { %v635_v32 = vpack.c.bf16 %v519_v3, %v517_v63  ;;  %v1409_v63 = vld [vmem:[#allocation8 + $0x10] sm:$0xff] }
  0xdf   :  { %v502_v4 = vpop.f32.mrf.mxu0  ;;  %783 = vmatmul.bf16.vlgmr.msrb.gmra.mxu0 %v767_v6  ;;  %v1413_v6 = vld [vmem:[#allocation8 + $0x18] sm:$0xff] }
  0xe2   :  { %619 = vmatmul.bf16.gmra.mxu2 %v1387_v46 }
  0xe3   :  { %v563_v23 = vpop.f32.mrf.mxu3 }
  0xe4   :  { %v546_v9 = vpop.f32.mrf.mxu1  ;;  %v771_v36 = vpack.c.bf16 %v563_v23, %v561_v19 }
  0xe5   :  { %v522_v40 = vpop.f32.mrf.mxu2 }
  0xe7   :  { %v504_v7 = vpop.f32.mrf.mxu0 }
  0xe8   :  { %v632_v8 = vpack.c.bf16 %v504_v7, %v502_v4 }
  0xea   :  { %704 = vmatmul.bf16.gmra.mxu3 %v632_v8 }
  0xeb   :  { %v566_v29 = vpop.f32.mrf.mxu3 }
  0xec   :  { %v548_v12 = vpop.f32.mrf.mxu1 }
  0xed   :  { %v524_v10 = vpop.f32.mrf.mxu2  ;;  %v768_v13 = vpack.c.bf16 %v548_v12, %v546_v9 }
  0xee   :  { %v636_v41 = vpack.c.bf16 %v524_v10, %v522_v40 }
  0xef   :  { %v507_v11 = vpop.f32.mrf.mxu0  ;;  %788 = vmatmul.bf16.gmra.mxu0 %v768_v13 }
  0xf2   :  { %624 = vmatmul.bf16.gmra.mxu2 %v1392_v49 }
  0xf3   :  { %v568_v33 = vpop.f32.mrf.mxu3 }
  0xf4   :  { %v551_v17 = vpop.f32.mrf.mxu1  ;;  %v772_v44 = vpack.c.bf16 %v568_v33, %v566_v29 }
  0xf5   :  { %v527_v14 = vpop.f32.mrf.mxu2 }
  0xf7   :  { %v509_v15 = vpop.f32.mrf.mxu0 }
  0xf8   :  { %v633_v16 = vpack.c.bf16 %v509_v15, %v507_v11  ;;  %v1417_v11 = vld [vmem:[#allocation8 + $0x20] sm:$0xff] }
  0xfa   :  { %709 = vmatmul.bf16.gmra.mxu3 %v633_v16 }
  0xfb   :  { %v571_v38 = vpop.f32.mrf.mxu3 }
  0xfc   :  { %v553_v20 = vpop.f32.mrf.mxu1 }
  0xfd   :  { %v529_v18 = vpop.f32.mrf.mxu2  ;;  %v769_v21 = vpack.c.bf16 %v553_v20, %v551_v17 }
  0xfe   :  { %v637_v47 = vpack.c.bf16 %v529_v18, %v527_v14  ;;  %v1421_v18 = vld [vmem:[#allocation8 + $0x28] sm:$0xff] }
  0xff   :  { %793 = vmatmul.bf16.gmra.mxu0 %v769_v21 }
 0x103   :  { %v573_v45 = vpop.f32.mrf.mxu3 }
 0x104   :  { %v556_v25 = vpop.f32.mrf.mxu1  ;;  %v773_v51 = vpack.c.bf16 %v573_v45, %v571_v38  ;;  %v1438_v45 = vld [vmem:[#allocation8 + $0x48] sm:$0xff] }
 0x105   :  { %v590_v22 = vpop.f32.mrf.mxu2 }
 0x10a   :  { %714 = vmatmul.bf16.gmra.mxu3 %v634_v24  ;;  %v1425_v24 = vld [vmem:[#allocation8 + $0x30] sm:$0xff] }
 0x10b   :  { %v576_v48 = vpop.f32.mrf.mxu3 }
 0x10c   :  { %v558_v28 = vpop.f32.mrf.mxu1 }
 0x10d   :  { %v592_v26 = vpop.f32.mrf.mxu2  ;;  %v770_v30 = vpack.c.bf16 %v558_v28, %v556_v25 }
 0x10e   :  { %v857_v27 = vpack.c.bf16 %v592_v26, %v590_v22 }
 0x10f   :  { %798 = vmatmul.bf16.gmra.mxu0 %v770_v30 }
 0x110   :  { %873 = vmatmul.bf16.vlgmr.msrb.gmra.mxu1 %v857_v27 }
 0x113   :  { %v578_v52 = vpop.f32.mrf.mxu3 }
 0x114   :  { %v774_v58 = vpack.c.bf16 %v578_v52, %v576_v48  ;;  %v1443_v52 = vld [vmem:[#allocation8 + $0x50] sm:$0xff] }
 0x115   :  { %v595_v31 = vpop.f32.mrf.mxu2 }
 0x11a   :  { %719 = vmatmul.bf16.gmra.mxu3 %v635_v32 }
 0x11d   :  { %v597_v34 = vpop.f32.mrf.mxu2 }
 0x11e   :  { %v858_v35 = vpack.c.bf16 %v597_v34, %v595_v31  ;;  %v1429_v31 = vld [vmem:[#allocation8 + $0x38] sm:$0xff] }
 0x11f   :  { %803 = vmatmul.bf16.gmra.mxu0 %v771_v36  ;;  %v1433_v36 = vld [vmem:[#allocation8 + $0x40] sm:$0xff] }
 0x120   :  { %878 = vmatmul.bf16.gmra.mxu1 %v858_v35 }
 0x125   :  { %v600_v37 = vpop.f32.mrf.mxu2 }
 0x12a   :  { %724 = vmatmul.bf16.gmra.mxu3 %v636_v41 }
 0x12d   :  { %v602_v42 = vpop.f32.mrf.mxu2 }
 0x12e   :  { %v859_v43 = vpack.c.bf16 %v602_v42, %v600_v37 }
 0x12f   :  { %808 = vmatmul.bf16.gmra.mxu0 %v772_v44 }
 0x130   :  { %883 = vmatmul.bf16.gmra.mxu1 %v859_v43 }
 0x135   :  { %v605_v46 = vpop.f32.mrf.mxu2 }
 0x13a   :  { %729 = vmatmul.bf16.gmra.mxu3 %v637_v47 }
 0x13d   :  { %v607_v49 = vpop.f32.mrf.mxu2 }
 0x13e   :  { %v860_v50 = vpack.c.bf16 %v607_v49, %v605_v46 }
 0x13f   :  { %813 = vmatmul.bf16.gmra.mxu0 %v773_v51 }
 0x140   :  { %888 = vmatmul.bf16.gmra.mxu1 %v860_v50 }
 0x145   :  { %v610_v53 = vpop.f32.mrf.mxu2 }
 0x14d   :  { %v612_v54 = vpop.f32.mrf.mxu2  ;;  %v695_v55 = vpop.f32.mrf.mxu3 }
 0x14e   :  { %v861_v56 = vpack.c.bf16 %v612_v54, %v610_v53  ;;  %v735_v57 = vmul.f32 %v695_v55, %v1403_v39 }
 0x14f   :  { %818 = vmatmul.bf16.gmra.mxu0 %v774_v58  ;;  %v1448_v58 = vld [vmem:[#allocation8 + $0x58] sm:$0xff] }
 0x150   :  { %751 = vst [vmem:[#allocation11] sm:$0xff] %v735_v57  ;;  %893 = vmatmul.bf16.gmra.mxu1 %v861_v56 }
 0x155   :  { %v615_v60 = vpop.f32.mrf.mxu2  ;;  %v697_v61 = vpop.f32.mrf.mxu3 }
 0x156   :  { %v736_v62 = vmul.f32 %v697_v61, %v1406_v59 }
 0x158   :  { %752 = vst [vmem:[#allocation11 + $0x8] sm:$0xff] %v736_v62 }
 0x15c   :  { %v784_v4 = vpop.f32.mrf.mxu0 }
 0x15d   :  { %v617_v0 = vpop.f32.mrf.mxu2  ;;  %v700_v1 = vpop.f32.mrf.mxu3  ;;  %v824_v5 = vmul.f32 %v784_v4, %v1403_v39 }
 0x15e   :  { %v862_v2 = vpack.c.bf16 %v617_v0, %v615_v60  ;;  %v737_v3 = vmul.f32 %v700_v1, %v1409_v63 }
 0x15f   :  { %841 = vst [vmem:[#allocation11 + $0x80] sm:$0xff] %v824_v5 }
 0x160   :  { %753 = vst [vmem:[#allocation11 + $0x10] sm:$0xff] %v737_v3  ;;  %898 = vmatmul.bf16.gmra.mxu1 %v862_v2 }
 0x164   :  { %v786_v9 = vpop.f32.mrf.mxu0 }
 0x165   :  { %v620_v40 = vpop.f32.mrf.mxu2  ;;  %v702_v7 = vpop.f32.mrf.mxu3  ;;  %v825_v10 = vmul.f32 %v786_v9, %v1406_v59 }
 0x166   :  { %v738_v8 = vmul.f32 %v702_v7, %v1413_v6 }
 0x167   :  { %842 = vst [vmem:[#allocation11 + $0x88] sm:$0xff] %v825_v10 }
 0x168   :  { %754 = vst [vmem:[#allocation11 + $0x18] sm:$0xff] %v738_v8  ;;  %v126_v8 = vld [vmem:[#allocation8 + $0x68] sm:$0xff] }
 0x16c   :  { %v789_v16 = vpop.f32.mrf.mxu0 }
 0x16d   :  { %v622_v12 = vpop.f32.mrf.mxu2  ;;  %v705_v13 = vpop.f32.mrf.mxu3  ;;  %v826_v17 = vmul.f32 %v789_v16, %v1409_v63 }
 0x16e   :  { %v863_v14 = vpack.c.bf16 %v622_v12, %v620_v40  ;;  %v739_v15 = vmul.f32 %v705_v13, %v1417_v11 }
 0x16f   :  { %843 = vst [vmem:[#allocation11 + $0x90] sm:$0xff] %v826_v17 }
 0x170   :  { %755 = vst [vmem:[#allocation11 + $0x20] sm:$0xff] %v739_v15  ;;  %903 = vmatmul.bf16.gmra.mxu1 %v863_v14  ;;  %v127_v15 = vld [vmem:[#allocation8 + $0x70] sm:$0xff] }
 0x174   :  { %v791_v22 = vpop.f32.mrf.mxu0 }
 0x175   :  { %v625_v19 = vpop.f32.mrf.mxu2  ;;  %v707_v20 = vpop.f32.mrf.mxu3  ;;  %v827_v23 = vmul.f32 %v791_v22, %v1413_v6  ;;  %v128_v22 = vld [vmem:[#allocation8 + $0x78] sm:$0xff] }
 0x176   :  { %v740_v21 = vmul.f32 %v707_v20, %v1421_v18 }
 0x177   :  { %844 = vst [vmem:[#allocation11 + $0x98] sm:$0xff] %v827_v23 }
 0x178   :  { %756 = vst [vmem:[#allocation11 + $0x28] sm:$0xff] %v740_v21 }
 0x17c   :  { %v794_v29 = vpop.f32.mrf.mxu0 }
 0x17d   :  { %v627_v25 = vpop.f32.mrf.mxu2  ;;  %v710_v26 = vpop.f32.mrf.mxu3  ;;  %v828_v30 = vmul.f32 %v794_v29, %v1417_v11 }
 0x17e   :  { %v864_v27 = vpack.c.bf16 %v627_v25, %v625_v19  ;;  %v741_v28 = vmul.f32 %v710_v26, %v1425_v24 }
 0x17f   :  { %845 = vst [vmem:[#allocation11 + $0xa0] sm:$0xff] %v828_v30 }
 0x180   :  { %757 = vst [vmem:[#allocation11 + $0x30] sm:$0xff] %v741_v28  ;;  %908 = vmatmul.bf16.gmra.mxu1 %v864_v27 }
 0x184   :  { %v796_v34 = vpop.f32.mrf.mxu0 }
 0x185   :  { %v712_v32 = vpop.f32.mrf.mxu3  ;;  %v829_v35 = vmul.f32 %v796_v34, %v1421_v18 }
 0x186   :  { %v742_v33 = vmul.f32 %v712_v32, %v1429_v31 }
 0x187   :  { %846 = vst [vmem:[#allocation11 + $0xa8] sm:$0xff] %v829_v35 }
 0x188   :  { %758 = vst [vmem:[#allocation11 + $0x38] sm:$0xff] %v742_v33 }
 0x18c   :  { %v799_v43 = vpop.f32.mrf.mxu0 }
 0x18d   :  { %v715_v37 = vpop.f32.mrf.mxu3  ;;  %v874_v38 = vpop.f32.mrf.mxu1  ;;  %v830_v44 = vmul.f32 %v799_v43, %v1425_v24 }
 0x18e   :  { %v743_v41 = vmul.f32 %v715_v37, %v1433_v36  ;;  %v914_v42 = vmul.f32 %v874_v38, %v1403_v39 }
 0x18f   :  { %847 = vst [vmem:[#allocation11 + $0xb0] sm:$0xff] %v830_v44 }
 0x190   :  { %759 = vst [vmem:[#allocation11 + $0x40] sm:$0xff] %v743_v41 }
 0x191   :  { %931 = vst [vmem:[#allocation11 + $0x100] sm:$0xff] %v914_v42 }
 0x194   :  { %v801_v50 = vpop.f32.mrf.mxu0 }
 0x195   :  { %v717_v46 = vpop.f32.mrf.mxu3  ;;  %v876_v47 = vpop.f32.mrf.mxu1  ;;  %v831_v51 = vmul.f32 %v801_v50, %v1429_v31 }
 0x196   :  { %v744_v48 = vmul.f32 %v717_v46, %v1438_v45  ;;  %v915_v49 = vmul.f32 %v876_v47, %v1406_v59 }
 0x197   :  { %848 = vst [vmem:[#allocation11 + $0xb8] sm:$0xff] %v831_v51 }
 0x198   :  { %760 = vst [vmem:[#allocation11 + $0x48] sm:$0xff] %v744_v48 }
 0x199   :  { %932 = vst [vmem:[#allocation11 + $0x108] sm:$0xff] %v915_v49 }
 0x19c   :  { %v804_v56 = vpop.f32.mrf.mxu0 }
 0x19d   :  { %v720_v53 = vpop.f32.mrf.mxu3  ;;  %v879_v39 = vpop.f32.mrf.mxu1  ;;  %v832_v57 = vmul.f32 %v804_v56, %v1433_v36 }
 0x19e   :  { %v745_v54 = vmul.f32 %v720_v53, %v1443_v52  ;;  %v916_v55 = vmul.f32 %v879_v39, %v1409_v63  ;;  %v125_v63 = vld [vmem:[#allocation8 + $0x60] sm:$0xff] }
 0x19f   :  { %849 = vst [vmem:[#allocation11 + $0xc0] sm:$0xff] %v832_v57 }
 0x1a0   :  { %761 = vst [vmem:[#allocation11 + $0x50] sm:$0xff] %v745_v54 }
 0x1a1   :  { %933 = vst [vmem:[#allocation11 + $0x110] sm:$0xff] %v916_v55 }
 0x1a4   :  { %v806_v0 = vpop.f32.mrf.mxu0 }
 0x1a5   :  { %v722_v59 = vpop.f32.mrf.mxu3  ;;  %v881_v60 = vpop.f32.mrf.mxu1  ;;  %v833_v1 = vmul.f32 %v806_v0, %v1438_v45 }
 0x1a6   :  { %v746_v61 = vmul.f32 %v722_v59, %v1448_v58  ;;  %v917_v62 = vmul.f32 %v881_v60, %v1413_v6 }
 0x1a7   :  { %850 = vst [vmem:[#allocation11 + $0xc8] sm:$0xff] %v833_v1 }
 0x1a8   :  { %762 = vst [vmem:[#allocation11 + $0x58] sm:$0xff] %v746_v61 }
 0x1a9   :  { %934 = vst [vmem:[#allocation11 + $0x118] sm:$0xff] %v917_v62 }
 0x1ac   :  { %v809_v40 = vpop.f32.mrf.mxu0 }
 0x1ad   :  { %v725_v2 = vpop.f32.mrf.mxu3  ;;  %v884_v3 = vpop.f32.mrf.mxu1  ;;  %v834_v7 = vmul.f32 %v809_v40, %v1443_v52 }
 0x1ae   :  { %v747_v4 = vmul.f32 %v725_v2, %v125_v63  ;;  %v918_v5 = vmul.f32 %v884_v3, %v1417_v11 }
 0x1af   :  { %851 = vst [vmem:[#allocation11 + $0xd0] sm:$0xff] %v834_v7 }
 0x1b0   :  { %763 = vst [vmem:[#allocation11 + $0x60] sm:$0xff] %v747_v4 }
 0x1b1   :  { %935 = vst [vmem:[#allocation11 + $0x120] sm:$0xff] %v918_v5 }
 0x1b4   :  { %v811_v13 = vpop.f32.mrf.mxu0 }
 0x1b5   :  { %v727_v6 = vpop.f32.mrf.mxu3  ;;  %v886_v9 = vpop.f32.mrf.mxu1  ;;  %v835_v14 = vmul.f32 %v811_v13, %v1448_v58 }
 0x1b6   :  { %v748_v10 = vmul.f32 %v727_v6, %v126_v8  ;;  %v919_v12 = vmul.f32 %v886_v9, %v1421_v18 }
 0x1b7   :  { %852 = vst [vmem:[#allocation11 + $0xd8] sm:$0xff] %v835_v14 }
 0x1b8   :  { %764 = vst [vmem:[#allocation11 + $0x68] sm:$0xff] %v748_v10 }
 0x1b9   :  { %936 = vst [vmem:[#allocation11 + $0x128] sm:$0xff] %v919_v12 }
 0x1bc   :  { %v814_v20 = vpop.f32.mrf.mxu0 }
 0x1bd   :  { %v730_v11 = vpop.f32.mrf.mxu3  ;;  %v889_v16 = vpop.f32.mrf.mxu1  ;;  %v836_v21 = vmul.f32 %v814_v20, %v125_v63 }
 0x1be   :  { %v749_v17 = vmul.f32 %v730_v11, %v127_v15  ;;  %v920_v19 = vmul.f32 %v889_v16, %v1425_v24 }
 0x1bf   :  { %853 = vst [vmem:[#allocation11 + $0xe0] sm:$0xff] %v836_v21 }
 0x1c0   :  { %765 = vst [vmem:[#allocation11 + $0x70] sm:$0xff] %v749_v17 }
 0x1c1   :  { %937 = vst [vmem:[#allocation11 + $0x130] sm:$0xff] %v920_v19 }
 0x1c4   :  { %v816_v27 = vpop.f32.mrf.mxu0 }
 0x1c5   :  { %v732_v23 = vpop.f32.mrf.mxu3  ;;  %v891_v18 = vpop.f32.mrf.mxu1  ;;  %v837_v28 = vmul.f32 %v816_v27, %v126_v8 }
 0x1c6   :  { %v750_v25 = vmul.f32 %v732_v23, %v128_v22  ;;  %v921_v26 = vmul.f32 %v891_v18, %v1429_v31 }
 0x1c7   :  { %854 = vst [vmem:[#allocation11 + $0xe8] sm:$0xff] %v837_v28 }
 0x1c8   :  { %766 = vst [vmem:[#allocation11 + $0x78] sm:$0xff] %v750_v25 }
 0x1c9   :  { %938 = vst [vmem:[#allocation11 + $0x138] sm:$0xff] %v921_v26 }
 0x1cc   :  { %v819_v24 = vpop.f32.mrf.mxu0 }
 0x1cd   :  { %v894_v29 = vpop.f32.mrf.mxu1  ;;  %v838_v32 = vmul.f32 %v819_v24, %v127_v15 }
 0x1ce   :  { %v922_v30 = vmul.f32 %v894_v29, %v1433_v36 }
 0x1cf   :  { %855 = vst [vmem:[#allocation11 + $0xf0] sm:$0xff] %v838_v32 }
 0x1d0   :  { %939 = vst [vmem:[#allocation11 + $0x140] sm:$0xff] %v922_v30 }
 0x1d4   :  { %v821_v35 = vpop.f32.mrf.mxu0 }
 0x1d5   :  { %v896_v33 = vpop.f32.mrf.mxu1  ;;  %v839_v37 = vmul.f32 %v821_v35, %v128_v22 }
 0x1d6   :  { %v923_v34 = vmul.f32 %v896_v33, %v1438_v45 }
 0x1d7   :  { %856 = vst [vmem:[#allocation11 + $0xf8] sm:$0xff] %v839_v37 }
 0x1d8   :  { %940 = vst [vmem:[#allocation11 + $0x148] sm:$0xff] %v923_v34 }
 0x1dd   :  { %v899_v31 = vpop.f32.mrf.mxu1 }
 0x1de   :  { %v924_v38 = vmul.f32 %v899_v31, %v1443_v52 }
 0x1e0   :  { %941 = vst [vmem:[#allocation11 + $0x150] sm:$0xff] %v924_v38 }
 0x1e5   :  { %v901_v41 = vpop.f32.mrf.mxu1 }
 0x1e6   :  { %v925_v42 = vmul.f32 %v901_v41, %v1448_v58 }
 0x1e8   :  { %942 = vst [vmem:[#allocation11 + $0x158] sm:$0xff] %v925_v42 }
 0x1ed   :  { %v904_v36 = vpop.f32.mrf.mxu1 }
 0x1ee   :  { %v926_v43 = vmul.f32 %v904_v36, %v125_v63 }
 0x1f0   :  { %943 = vst [vmem:[#allocation11 + $0x160] sm:$0xff] %v926_v43 }
 0x1f5   :  { %v906_v44 = vpop.f32.mrf.mxu1 }
 0x1f6   :  { %v927_v46 = vmul.f32 %v906_v44, %v126_v8 }
 0x1f8   :  { %944 = vst [vmem:[#allocation11 + $0x168] sm:$0xff] %v927_v46 }
 0x1fd   :  { %v909_v47 = vpop.f32.mrf.mxu1 }
 0x1fe   :  { %v928_v45 = vmul.f32 %v909_v47, %v127_v15 }
 0x200   :  { %945 = vst [vmem:[#allocation11 + $0x170] sm:$0xff] %v928_v45 }
 0x205   :  { %v911_v48 = vpop.f32.mrf.mxu1 }
 0x206   :  { %v929_v49 = vmul.f32 %v911_v48, %v128_v22 }
 0x208   :  { %946 = vst [vmem:[#allocation11 + $0x178] sm:$0xff] %v929_v49 }
 0x209   :  { %959 = dma.vmem_to_hbm [thread:$0]  %s952_s3, 6144, %s954_s13, [#allocation5], %s1326_s7, %s1326_s7, %s1327_s8  }
 0x20a   :  { %1319 = dma.done.wait [#allocation5], 6144  }
 0x20b   :  { %1320 = vsyncadd [#allocation5], 4294961152 }
 0x20c   :  { %964 = vsyncpa [#allocation4], 1 }
 0x20d   :  { %965 = vsyncpa [#allocation7], 1 }
 0x20e   :  { %966 = vsyncpa [#allocation10], 1 }
 0x20f   :  { %967 = vsyncpa [#allocation5], 1 }

</bundles_post_ra>
